<compile_context>
chip_gen: v7x
topology: tpu7x:2x2x1
jax: 0.10.0
libtpu: 0.0.40
codegen_flags: <defaults>
</compile_context>

<pallas_src>
import functools

import numpy as np
import jax
import jax.numpy as jnp
from jax import lax
from jax.experimental import pallas as pl
from jax.experimental.pallas import tpu as pltpu


def firwin_lowpass(numtaps: int, cutoff: float) -> np.ndarray:
    """Deterministic re-implementation of scipy.signal.firwin defaults:
    lowpass, hamming window, pass_zero=True, scale=True."""
    m = np.arange(numtaps, dtype=np.float64) - (numtaps - 1) / 2.0
    h = cutoff * np.sinc(cutoff * m)
    n = np.arange(numtaps, dtype=np.float64)
    win = 0.54 - 0.46 * np.cos(2.0 * np.pi * n / (numtaps - 1))
    h = h * win
    h = h / h.sum()  # unity gain at DC (scale=True, pass_zero)
    return h.astype(np.float32)


def _banded_tap_matrices(taps: np.ndarray):
    """128x128 constants for the (rows, 128) banded-conv formulation.

    With x[t] stored as D[r, c] (t = 128*r + c), torch-conv1d "valid" output is
        out[r, c] = sum_k taps[k] * x[128*r + c + k]
                  = (D[r] @ W_lo)[c] + (D[r+1] @ W_hi)[c]
    """
    numtaps = len(taps)
    w_lo = np.zeros((128, 128), np.float32)
    w_hi = np.zeros((128, 128), np.float32)
    for c in range(128):
        for k in range(numtaps):
            j = c + k
            if j < 128:
                w_lo[j, c] = taps[k]
            else:
                w_hi[j - 128, c] = taps[k]
    return w_lo, w_hi


def _int_pow_abs(x, power):
    """|x| ** power with cheap VPU multiplies for integer powers."""
    if isinstance(power, (int, np.integer)) and int(power) >= 1:
        p = int(power)
        base = x if p % 2 == 0 else jnp.abs(x)   # abs is redundant for even powers
        r = base
        for _ in range(p - 1):
            r = r * base
        return r
    return jnp.abs(x) ** power  # float powers fall back to the EUP pow


def _td_lowpass_kernel(yt_ref, yp_ref, yth_ref, yph_ref, wlo_ref, whi_ref,
                       out_ref, *, rt, R, tout, power):
    # yt_ref/yp_ref:   (B, rt, 128) row-tile of y_true / y_pred
    # yth_ref/yph_ref: (B, hb, 128) halo; row 0 is the row right after this tile
    # wlo_ref/whi_ref: (128, 128)   constant banded tap matrices
    # out_ref:         (1, 2, 128)  per-lane partial sums (row0 = num, row1 = den)
    i = pl.program_id(0)
    B = yt_ref.shape[0]

    wlo = wlo_ref[...]
    whi = whi_ref[...]

    # Row / output-position validity (batch independent, built once per tile).
    # Kept unconditional: it is a handful of VPU ops/elem and the VPU has slack
    # now that tap accumulation runs on the MXU; select masks also guarantee the
    # ragged last tile / clamped halo never feed garbage into arithmetic.
    row = lax.broadcasted_iota(jnp.int32, (rt, 1), 0) + i * rt      # global row
    col = lax.broadcasted_iota(jnp.int32, (rt, 128), 1)
    row_ok = row < R                                                # (rt, 1)
    out_ok = (row * 128 + col) < tout                               # (rt, 128)
    halo_ok = (i + 1) * rt < R        # is the halo row a real next row?

    num_pl = jnp.zeros((1, 128), jnp.float32)
    den_pl = jnp.zeros((1, 128), jnp.float32)
    for b in range(B):                 # static unroll; OSCE batches are small
        yt = yt_ref[b]                 # (rt, 128)
        yp = yp_ref[b]
        # Select-mask (never multiply) so over-read rows stay out of the matmuls
        # even if the OOB fill is NaN/Inf.
        d = jnp.where(row_ok, yt - yp, 0.0)
        ytm = jnp.where(row_ok, yt, 0.0)

        d_h = jnp.where(halo_ok, yth_ref[b, 0:1, :] - yph_ref[b, 0:1, :], 0.0)
        if rt > 1:
            d_next = jnp.concatenate([d[1:], d_h], axis=0)   # D[r+1] for each row
        else:
            d_next = d_h

        # Banded FIR on the MXU: out[r] = D[r] @ W_lo + D[r+1] @ W_hi.
        acc = (jnp.dot(d, wlo, preferred_element_type=jnp.float32)
               + jnp.dot(d_next, whi, preferred_element_type=jnp.float32))

        num_pl = num_pl + jnp.sum(
            jnp.where(out_ok, _int_pow_abs(acc, power), 0.0),
            axis=0, keepdims=True)
        den_pl = den_pl + jnp.sum(_int_pow_abs(ytm, power),
                                  axis=0, keepdims=True)

    out_ref[...] = jnp.concatenate([num_pl, den_pl], axis=0)[None]


def _pick_rows_per_tile(batch, rows):
    # Double-buffered main blocks: 2 arrays * 2 bufs * B*rt*512 B, plus a few
    # (rt, 128) f32 temps live inside the per-batch loop.
    budget = 12 * 1024 * 1024
    denom = 2048 * max(int(batch), 1) + 6144
    rt_cap = max(8, (budget // denom) // 8 * 8)
    if rows < 16:
        return rows                        # single full-extent tile
    # >= 2 similar-size "parallel" tiles so both v7x TensorCores get work.
    rt = min(rt_cap, ((rows + 1) // 2 + 7) // 8 * 8)
    return max(8, rt)


def td_lowpass_loss(y_true, y_pred, weight, power=2, rows_per_tile=None):
    """JAX/Pallas implementation of TDLowpass.forward. Accepts (B, T) or (B, 1, T)."""
    y_true = jnp.asarray(y_true, jnp.float32)
    y_pred = jnp.asarray(y_pred, jnp.float32)
    if y_true.ndim == 3:        # (B, C=1, T) -> (B, T)
        y_true = y_true.reshape(-1, y_true.shape[-1])
    if y_pred.ndim == 3:
        y_pred = y_pred.reshape(-1, y_pred.shape[-1])
    assert y_true.shape == y_pred.shape
    B, T = y_true.shape

    # FIR taps are a fixed (requires_grad=False) buffer -> baked into two
    # compile-time banded matrices.  `weight` must be concrete (numpy / device
    # array), not a tracer; tracing through the filter is not supported.
    taps = np.asarray(weight, dtype=np.float64).reshape(-1).astype(np.float32)
    numtaps = int(taps.shape[0])
    assert 1 <= numtaps <= 129, "two-row banded formulation needs numtaps <= 129"
    assert T >= numtaps, "signal shorter than the FIR filter"
    tout = T - numtaps + 1

    R = -(-T // 128)
    t_pad = R * 128
    if t_pad != T:
        # TODO(synk): this zero-pad is a full-array copy only needed to make the
        # free (B, T) -> (B, R, 128) bitcast legal; a ragged Element-indexed
        # block would remove it.
        pad = ((0, 0), (0, t_pad - T))
        y_true = jnp.pad(y_true, pad)
        y_pred = jnp.pad(y_pred, pad)
    yt3 = y_true.reshape(B, R, 128)      # free bitcast (row-major contiguous)
    yp3 = y_pred.reshape(B, R, 128)

    rt = _pick_rows_per_tile(B, R) if rows_per_tile is None else int(rows_per_tile)
    assert rt == R or (rt % 8 == 0 and rt >= 8), \
        "rows_per_tile must equal R or be a multiple of 8"
    n_tiles = -(-R // rt)
    hb = 8 if R >= 8 else R              # halo block rows ((8,128) rule / full extent)
    halo_stride = max(rt // hb, 1)       # exact whenever the halo is actually used
    halo_clamp = (R - 1) // hb           # keep the halo DMA in-bounds on the last tile

    w_lo_np, w_hi_np = _banded_tap_matrices(taps)
    w_lo = jnp.asarray(w_lo_np)
    w_hi = jnp.asarray(w_hi_np)

    kernel = functools.partial(_td_lowpass_kernel, rt=rt, R=R, tout=tout, power=power)

    main_spec = pl.BlockSpec((B, rt, 128), lambda i: (0, i, 0))
    halo_spec = pl.BlockSpec(
        (B, hb, 128),
        lambda i: (0, jnp.minimum((i + 1) * halo_stride, halo_clamp), 0))
    w_spec = pl.BlockSpec((128, 128), lambda i: (0, 0))

    is_int_power = isinstance(power, (int, np.integer))
    partials = pl.pallas_call(
        kernel,
        grid=(n_tiles,),
        in_specs=[main_spec, main_spec, halo_spec, halo_spec, w_spec, w_spec],
        out_specs=pl.BlockSpec((1, 2, 128), lambda i: (i, 0, 0)),
        out_shape=jax.ShapeDtypeStruct((n_tiles, 2, 128), jnp.float32),
        compiler_params=pltpu.CompilerParams(
            dimension_semantics=("parallel",),
            vmem_limit_bytes=32 * 1024 * 1024),
        cost_estimate=pl.CostEstimate(
            flops=int(B) * int(t_pad) * (4 * 128 + 8),
            transcendentals=0 if is_int_power else int(B) * int(t_pad),
            bytes_accessed=int(4 * 2 * B * (t_pad + n_tiles * hb * 128)
                               + 4 * 2 * 128 * 128 + 4 * n_tiles * 2 * 128)),
    )(yt3, yp3, yt3, yp3, w_lo, w_hi)

    num = jnp.sum(partials[:, 0, :])
    den = jnp.sum(partials[:, 1, :])
    num_mean = num / jnp.float32(B * tout)
    den_mean = den / jnp.float32(B * T)
    loss = num_mean / (den_mean + jnp.float32(float(1e-6) ** power))
    # Faithful to the PyTorch source `loss = loss ** 1 / self.power` (== loss / power).
    return loss / power


def _ref_loss(y_true, y_pred, w, power):
    """Pure-JAX reference of the PyTorch forward (for verification)."""
    diff = y_true - y_pred
    numtaps = w.shape[0]
    tout = diff.shape[1] - numtaps + 1
    cols = jnp.stack([diff[:, k:k + tout] for k in range(numtaps)], axis=-1)
    dlp = cols @ w
    loss = jnp.mean(jnp.abs(dlp) ** power) / (
        jnp.mean(jnp.abs(y_true) ** power) + 1e-6 ** power)
    return loss / power


if __name__ == "__main__":
    numtaps, cutoff, power = 15, 0.2, 2
    weight = firwin_lowpass(numtaps, cutoff)  # fixed FIR taps (torch buffer analog)

    key = jax.random.PRNGKey(0)
    k1, k2, k3, k4 = jax.random.split(key, 4)

    # Case 1: (B, 1, T) input with T not a multiple of 128 -> pad path, 1-tile grid.
    B1, T1 = 2, 400
    yt1 = jax.random.normal(k1, (B1, 1, T1), dtype=jnp.float32)
    yp1 = jax.random.normal(k2, (B1, 1, T1), dtype=jnp.float32)
    loss1 = td_lowpass_loss(yt1, yp1, weight, power=power)

    # Case 2: (B, T) with T % 128 == 0 -> no pad; auto tiling gives a 2-step
    # parallel grid, forced rt=8 exercises a longer grid, halo fetch/clamping
    # and over-read masking on the ragged last tile.
    B2, T2 = 3, 5120
    yt2 = jax.random.normal(k3, (B2, T2), dtype=jnp.float32)
    yp2 = jax.random.normal(k4, (B2, T2), dtype=jnp.float32)
    loss2a = td_lowpass_loss(yt2, yp2, weight, power=power)
    loss2b = td_lowpass_loss(yt2, yp2, weight, power=power, rows_per_tile=8)
    jax.block_until_ready((loss1, loss2a, loss2b))

    w = jnp.asarray(weight)
    ref1 = np.asarray(jax.block_until_ready(
        _ref_loss(yt1.reshape(B1, T1), yp1.reshape(B1, T1), w, power)))
    ref2 = np.asarray(jax.block_until_ready(_ref_loss(yt2, yp2, w, power)))

    for got, want in [(loss1, ref1), (loss2a, ref2), (loss2b, ref2)]:
        assert np.allclose(np.asarray(got), want, rtol=2e-4, atol=1e-6), (
            float(got), float(want))

    print("KERNEL_OK")
</pallas_src>

<mosaic_0001>
module attributes {stable_mosaic.version = 11 : i64} {
  func.func @_td_lowpass_kernel(%arg0: i32, %arg1: memref<2x4x128xf32, #tpu.memory_space<vmem>>, %arg2: memref<2x4x128xf32, #tpu.memory_space<vmem>>, %arg3: memref<2x4x128xf32, #tpu.memory_space<vmem>>, %arg4: memref<2x4x128xf32, #tpu.memory_space<vmem>>, %arg5: memref<128x128xf32, #tpu.memory_space<vmem>>, %arg6: memref<128x128xf32, #tpu.memory_space<vmem>>, %arg7: memref<1x2x128xf32, #tpu.memory_space<vmem>>) attributes {dimension_semantics = [#tpu.dimension_semantics<parallel>], iteration_bounds = array<i64: 1>, scalar_prefetch = 0 : i64, scratch_operands = 0 : i64, tpu.core_type = #tpu.core_type<tc>, window_params = [{transform_indices = @transform_0, window_bounds = array<i64: 2, 4, 128>}, {transform_indices = @transform_1, window_bounds = array<i64: 2, 4, 128>}, {transform_indices = @transform_2, window_bounds = array<i64: 2, 4, 128>}, {transform_indices = @transform_3, window_bounds = array<i64: 2, 4, 128>}, {pipeline_mode = #tpu.pipeline_mode<synchronous>, transform_indices = @transform_4, window_bounds = array<i64: 128, 128>}, {pipeline_mode = #tpu.pipeline_mode<synchronous>, transform_indices = @transform_5, window_bounds = array<i64: 128, 128>}, {transform_indices = @transform_6, window_bounds = array<i64: 1, 2, 128>}]} {
    %c0 = arith.constant 0 : index
    %c0_0 = arith.constant 0 : index
    %0 = vector.load %arg5[%c0, %c0_0] : memref<128x128xf32, #tpu.memory_space<vmem>>, vector<128x128xf32>
    %c0_1 = arith.constant 0 : index
    %c0_2 = arith.constant 0 : index
    %1 = vector.load %arg6[%c0_1, %c0_2] : memref<128x128xf32, #tpu.memory_space<vmem>>, vector<128x128xf32>
    %2 = tpu.iota {dimensions = array<i32: 0>} : vector<4x1xi32>
    %c4_i32 = arith.constant 4 : i32
    %3 = arith.muli %arg0, %c4_i32 : i32
    %4 = vector.broadcast %3 : i32 to vector<4x1xi32>
    %5 = arith.addi %2, %4 : vector<4x1xi32>
    %6 = tpu.iota {dimensions = array<i32: 1>} : vector<4x128xi32>
    %c4_i32_3 = arith.constant 4 : i32
    %7 = vector.broadcast %c4_i32_3 : i32 to vector<4x1xi32>
    %8 = arith.cmpi slt, %5, %7 : vector<4x1xi32>
    %c128_i32 = arith.constant 128 : i32
    %9 = vector.broadcast %c128_i32 : i32 to vector<4x1xi32>
    %10 = arith.muli %5, %9 : vector<4x1xi32>
    %11 = vector.broadcast %10 : vector<4x1xi32> to vector<4x128xi32>
    %12 = arith.addi %11, %6 : vector<4x128xi32>
    %c386_i32 = arith.constant 386 : i32
    %13 = vector.broadcast %c386_i32 : i32 to vector<4x128xi32>
    %14 = arith.cmpi slt, %12, %13 : vector<4x128xi32>
    %c1_i32 = arith.constant 1 : i32
    %15 = arith.addi %arg0, %c1_i32 : i32
    %c4_i32_4 = arith.constant 4 : i32
    %16 = arith.muli %15, %c4_i32_4 : i32
    %c4_i32_5 = arith.constant 4 : i32
    %17 = arith.cmpi slt, %16, %c4_i32_5 : i32
    %cst = arith.constant 0.000000e+00 : f32
    %18 = vector.broadcast %cst : f32 to vector<1x128xf32>
    %cst_6 = arith.constant 0.000000e+00 : f32
    %19 = vector.broadcast %cst_6 : f32 to vector<1x128xf32>
    %c0_7 = arith.constant 0 : index
    %c0_8 = arith.constant 0 : index
    %c0_9 = arith.constant 0 : index
    %20 = vector.load %arg1[%c0_7, %c0_8, %c0_9] : memref<2x4x128xf32, #tpu.memory_space<vmem>>, vector<1x4x128xf32>
    %21 = vector.shape_cast %20 : vector<1x4x128xf32> to vector<4x128xf32>
    %c0_10 = arith.constant 0 : index
    %c0_11 = arith.constant 0 : index
    %c0_12 = arith.constant 0 : index
    %22 = vector.load %arg2[%c0_10, %c0_11, %c0_12] : memref<2x4x128xf32, #tpu.memory_space<vmem>>, vector<1x4x128xf32>
    %23 = vector.shape_cast %22 : vector<1x4x128xf32> to vector<4x128xf32>
    %24 = arith.subf %21, %23 : vector<4x128xf32>
    %cst_13 = arith.constant 0.000000e+00 : f32
    %25 = vector.shape_cast %8 : vector<4x1xi1> to vector<4x1xi1>
    %26 = vector.broadcast %25 : vector<4x1xi1> to vector<4x128xi1>
    %27 = vector.broadcast %cst_13 : f32 to vector<4x128xf32>
    %28 = arith.select %26, %24, %27 : vector<4x128xi1>, vector<4x128xf32>
    %cst_14 = arith.constant 0.000000e+00 : f32
    %29 = vector.shape_cast %8 : vector<4x1xi1> to vector<4x1xi1>
    %30 = vector.broadcast %29 : vector<4x1xi1> to vector<4x128xi1>
    %31 = vector.broadcast %cst_14 : f32 to vector<4x128xf32>
    %32 = arith.select %30, %21, %31 : vector<4x128xi1>, vector<4x128xf32>
    %c0_15 = arith.constant 0 : index
    %c0_16 = arith.constant 0 : index
    %c0_17 = arith.constant 0 : index
    %33 = vector.load %arg3[%c0_15, %c0_16, %c0_17] : memref<2x4x128xf32, #tpu.memory_space<vmem>>, vector<1x1x128xf32>
    %34 = vector.shape_cast %33 : vector<1x1x128xf32> to vector<1x128xf32>
    %c0_18 = arith.constant 0 : index
    %c0_19 = arith.constant 0 : index
    %c0_20 = arith.constant 0 : index
    %35 = vector.load %arg4[%c0_18, %c0_19, %c0_20] : memref<2x4x128xf32, #tpu.memory_space<vmem>>, vector<1x1x128xf32>
    %36 = vector.shape_cast %35 : vector<1x1x128xf32> to vector<1x128xf32>
    %37 = arith.subf %34, %36 : vector<1x128xf32>
    %cst_21 = arith.constant 0.000000e+00 : f32
    %38 = vector.broadcast %cst_21 : f32 to vector<1x128xf32>
    %39 = arith.select %17, %37, %38 : vector<1x128xf32>
    %40 = vector.extract_strided_slice %28 {offsets = [1, 0], sizes = [3, 128], strides = [1, 1]} : vector<4x128xf32> to vector<3x128xf32>
    %41 = tpu.concatenate %40, %39 in 0 : vector<3x128xf32>, vector<1x128xf32> -> vector<4x128xf32>
    %cst_22 = arith.constant dense<0.000000e+00> : vector<4x128xf32>
    %42 = tpu.matmul %28, %0, %cst_22 {dimension_numbers = #tpu.dot_dimension_numbers<[1], [0], [0], [1], [0, 0, 1, 1], [], []>} : vector<4x128xf32>, vector<128x128xf32>, vector<4x128xf32> -> vector<4x128xf32>
    %cst_23 = arith.constant dense<0.000000e+00> : vector<4x128xf32>
    %43 = tpu.matmul %41, %1, %cst_23 {dimension_numbers = #tpu.dot_dimension_numbers<[1], [0], [0], [1], [0, 0, 1, 1], [], []>} : vector<4x128xf32>, vector<128x128xf32>, vector<4x128xf32> -> vector<4x128xf32>
    %44 = arith.addf %42, %43 : vector<4x128xf32>
    %45 = arith.mulf %44, %44 : vector<4x128xf32>
    %cst_24 = arith.constant 0.000000e+00 : f32
    %46 = vector.broadcast %cst_24 : f32 to vector<4x128xf32>
    %47 = arith.select %14, %45, %46 : vector<4x128xi1>, vector<4x128xf32>
    %cst_25 = arith.constant dense<0.000000e+00> : vector<128xf32>
    %48 = vector.multi_reduction <add>, %47, %cst_25 [0] : vector<4x128xf32> to vector<128xf32>
    %49 = vector.shape_cast %48 : vector<128xf32> to vector<1x128xf32>
    %50 = arith.addf %18, %49 : vector<1x128xf32>
    %51 = arith.mulf %32, %32 : vector<4x128xf32>
    %cst_26 = arith.constant dense<0.000000e+00> : vector<128xf32>
    %52 = vector.multi_reduction <add>, %51, %cst_26 [0] : vector<4x128xf32> to vector<128xf32>
    %53 = vector.shape_cast %52 : vector<128xf32> to vector<1x128xf32>
    %54 = arith.addf %19, %53 : vector<1x128xf32>
    %c1 = arith.constant 1 : index
    %c0_27 = arith.constant 0 : index
    %c0_28 = arith.constant 0 : index
    %55 = vector.load %arg1[%c1, %c0_27, %c0_28] : memref<2x4x128xf32, #tpu.memory_space<vmem>>, vector<1x4x128xf32>
    %56 = vector.shape_cast %55 : vector<1x4x128xf32> to vector<4x128xf32>
    %c1_29 = arith.constant 1 : index
    %c0_30 = arith.constant 0 : index
    %c0_31 = arith.constant 0 : index
    %57 = vector.load %arg2[%c1_29, %c0_30, %c0_31] : memref<2x4x128xf32, #tpu.memory_space<vmem>>, vector<1x4x128xf32>
    %58 = vector.shape_cast %57 : vector<1x4x128xf32> to vector<4x128xf32>
    %59 = arith.subf %56, %58 : vector<4x128xf32>
    %cst_32 = arith.constant 0.000000e+00 : f32
    %60 = vector.shape_cast %8 : vector<4x1xi1> to vector<4x1xi1>
    %61 = vector.broadcast %60 : vector<4x1xi1> to vector<4x128xi1>
    %62 = vector.broadcast %cst_32 : f32 to vector<4x128xf32>
    %63 = arith.select %61, %59, %62 : vector<4x128xi1>, vector<4x128xf32>
    %cst_33 = arith.constant 0.000000e+00 : f32
    %64 = vector.shape_cast %8 : vector<4x1xi1> to vector<4x1xi1>
    %65 = vector.broadcast %64 : vector<4x1xi1> to vector<4x128xi1>
    %66 = vector.broadcast %cst_33 : f32 to vector<4x128xf32>
    %67 = arith.select %65, %56, %66 : vector<4x128xi1>, vector<4x128xf32>
    %c1_34 = arith.constant 1 : index
    %c0_35 = arith.constant 0 : index
    %c0_36 = arith.constant 0 : index
    %68 = vector.load %arg3[%c1_34, %c0_35, %c0_36] : memref<2x4x128xf32, #tpu.memory_space<vmem>>, vector<1x1x128xf32>
    %69 = vector.shape_cast %68 : vector<1x1x128xf32> to vector<1x128xf32>
    %c1_37 = arith.constant 1 : index
    %c0_38 = arith.constant 0 : index
    %c0_39 = arith.constant 0 : index
    %70 = vector.load %arg4[%c1_37, %c0_38, %c0_39] : memref<2x4x128xf32, #tpu.memory_space<vmem>>, vector<1x1x128xf32>
    %71 = vector.shape_cast %70 : vector<1x1x128xf32> to vector<1x128xf32>
    %72 = arith.subf %69, %71 : vector<1x128xf32>
    %cst_40 = arith.constant 0.000000e+00 : f32
    %73 = vector.broadcast %cst_40 : f32 to vector<1x128xf32>
    %74 = arith.select %17, %72, %73 : vector<1x128xf32>
    %75 = vector.extract_strided_slice %63 {offsets = [1, 0], sizes = [3, 128], strides = [1, 1]} : vector<4x128xf32> to vector<3x128xf32>
    %76 = tpu.concatenate %75, %74 in 0 : vector<3x128xf32>, vector<1x128xf32> -> vector<4x128xf32>
    %cst_41 = arith.constant dense<0.000000e+00> : vector<4x128xf32>
    %77 = tpu.matmul %63, %0, %cst_41 {dimension_numbers = #tpu.dot_dimension_numbers<[1], [0], [0], [1], [0, 0, 1, 1], [], []>} : vector<4x128xf32>, vector<128x128xf32>, vector<4x128xf32> -> vector<4x128xf32>
    %cst_42 = arith.constant dense<0.000000e+00> : vector<4x128xf32>
    %78 = tpu.matmul %76, %1, %cst_42 {dimension_numbers = #tpu.dot_dimension_numbers<[1], [0], [0], [1], [0, 0, 1, 1], [], []>} : vector<4x128xf32>, vector<128x128xf32>, vector<4x128xf32> -> vector<4x128xf32>
    %79 = arith.addf %77, %78 : vector<4x128xf32>
    %80 = arith.mulf %79, %79 : vector<4x128xf32>
    %cst_43 = arith.constant 0.000000e+00 : f32
    %81 = vector.broadcast %cst_43 : f32 to vector<4x128xf32>
    %82 = arith.select %14, %80, %81 : vector<4x128xi1>, vector<4x128xf32>
    %cst_44 = arith.constant dense<0.000000e+00> : vector<128xf32>
    %83 = vector.multi_reduction <add>, %82, %cst_44 [0] : vector<4x128xf32> to vector<128xf32>
    %84 = vector.shape_cast %83 : vector<128xf32> to vector<1x128xf32>
    %85 = arith.addf %50, %84 : vector<1x128xf32>
    %86 = arith.mulf %67, %67 : vector<4x128xf32>
    %cst_45 = arith.constant dense<0.000000e+00> : vector<128xf32>
    %87 = vector.multi_reduction <add>, %86, %cst_45 [0] : vector<4x128xf32> to vector<128xf32>
    %88 = vector.shape_cast %87 : vector<128xf32> to vector<1x128xf32>
    %89 = arith.addf %54, %88 : vector<1x128xf32>
    %90 = tpu.concatenate %85, %89 in 0 : vector<1x128xf32>, vector<1x128xf32> -> vector<2x128xf32>
    %91 = vector.shape_cast %90 : vector<2x128xf32> to vector<1x2x128xf32>
    %c0_46 = arith.constant 0 : index
    %c0_47 = arith.constant 0 : index
    %c0_48 = arith.constant 0 : index
    %92 = vector.load %arg7[%c0_46, %c0_47, %c0_48] : memref<1x2x128xf32, #tpu.memory_space<vmem>>, vector<1x2x128xf32>
    tpu.vector_store %arg7[%c0_46, %c0_47, %c0_48], %91 {strides = array<i32>} : memref<1x2x128xf32, #tpu.memory_space<vmem>>, vector<1x2x128xf32>,
    return
  }
  func.func @transform_0(%arg0: i32) -> (i32, i32, i32) {
    %c0_i32 = arith.constant 0 : i32
    %c0_i32_0 = arith.constant 0 : i32
    %c0_i32_1 = arith.constant 0 : i32
    return %c0_i32, %arg0, %c0_i32_0 : i32, i32, i32
  }
  func.func @transform_1(%arg0: i32) -> (i32, i32, i32) {
    %c0_i32 = arith.constant 0 : i32
    %c0_i32_0 = arith.constant 0 : i32
    %c0_i32_1 = arith.constant 0 : i32
    return %c0_i32, %arg0, %c0_i32_0 : i32, i32, i32
  }
  func.func @transform_2(%arg0: i32) -> (i32, i32, i32) {
    %c1_i32 = arith.constant 1 : i32
    %0 = arith.addi %arg0, %c1_i32 : i32
    %c1_i32_0 = arith.constant 1 : i32
    %1 = arith.muli %0, %c1_i32_0 : i32
    %c0_i32 = arith.constant 0 : i32
    %2 = arith.minsi %1, %c0_i32 : i32
    %c0_i32_1 = arith.constant 0 : i32
    %c0_i32_2 = arith.constant 0 : i32
    %c0_i32_3 = arith.constant 0 : i32
    return %c0_i32_1, %2, %c0_i32_2 : i32, i32, i32
  }
  func.func @transform_3(%arg0: i32) -> (i32, i32, i32) {
    %c1_i32 = arith.constant 1 : i32
    %0 = arith.addi %arg0, %c1_i32 : i32
    %c1_i32_0 = arith.constant 1 : i32
    %1 = arith.muli %0, %c1_i32_0 : i32
    %c0_i32 = arith.constant 0 : i32
    %2 = arith.minsi %1, %c0_i32 : i32
    %c0_i32_1 = arith.constant 0 : i32
    %c0_i32_2 = arith.constant 0 : i32
    %c0_i32_3 = arith.constant 0 : i32
    return %c0_i32_1, %2, %c0_i32_2 : i32, i32, i32
  }
  func.func @transform_4(%arg0: i32) -> (i32, i32) {
    %c0_i32 = arith.constant 0 : i32
    %c0_i32_0 = arith.constant 0 : i32
    %c0_i32_1 = arith.constant 0 : i32
    return %c0_i32, %c0_i32_0 : i32, i32
  }
  func.func @transform_5(%arg0: i32) -> (i32, i32) {
    %c0_i32 = arith.constant 0 : i32
    %c0_i32_0 = arith.constant 0 : i32
    %c0_i32_1 = arith.constant 0 : i32
    return %c0_i32, %c0_i32_0 : i32, i32
  }
  func.func @transform_6(%arg0: i32) -> (i32, i32, i32) {
    %c0_i32 = arith.constant 0 : i32
    %c0_i32_0 = arith.constant 0 : i32
    %c0_i32_1 = arith.constant 0 : i32
    return %arg0, %c0_i32, %c0_i32_0 : i32, i32, i32
  }
}

</mosaic_0001>

<bundles_post_ra>
// kernel: tpu_custom_call.1
= control target key start
LH: loop header
LB: loop body
LE: loop exit
PB: predicated region body
PF: predicated region fallthrough
CT: control target
= control target key end

     0   :  { %11 = vsyncpa [#allocation3], 0  ;;  %s1255_s0 = inlined_call_operand.hbm [shape: f32[2,4,128], index: 0, kind: input, shape index: {}]   ;;  %s1256_s1 = inlined_call_operand.hbm [shape: f32[2,4,128], index: 1, kind: input, shape index: {}]   ;;  %s1257_s2 = inlined_call_operand.hbm [shape: f32[2,4,128], index: 2, kind: input, shape index: {}]   ;;  %s1258_s3 = inlined_call_operand.vmem [shape: f32[2,4,128], index: 3, kind: input, shape index: {}]   ;;  %s1259_s4 = inlined_call_operand.hbm [shape: f32[128,128], index: 4, kind: input, shape index: {}]   ;;  %s1260_s5 = inlined_call_operand.hbm [shape: f32[128,128], index: 5, kind: input, shape index: {}]   ;;  %s1261_s6 = inlined_call_operand.hbm [shape: f32[1,2,128], index: 6, kind: output, shape index: {}]  }
   0x1   :  { %12 = vsyncpa [#allocation6], 0 }
   0x2   :  { %13 = vsyncpa [#allocation9], 0 }
   0x3   :  { %14 = vsyncpa [#allocation4], 0  ;;  %s1026_s21 = smov [#allocation5]   ;;  %s1027_s23 = smov [#allocation8]  }
   0x4   :  { %s32_s22 = sshll.u32 %s1026_s21, 4  ;;  %s73_s24 = sshll.u32 %s1027_s23, 4  ;;  %s33_s22 = int_to_ptr.vmem [resolvable:$true] %s32_s22  ;;  %s1074_s24 = int_to_ptr.vmem [resolvable:$true] %s73_s24 }
   0x5   :  { %s886_s26 = scalar_lea.hbm %s1256_s1, 128 }
   0x6   :  { %p887_p0 = scmp.ne.s32.totalorder %s1256_s1, %s886_s26  ;;  %p890_p1 = scmp.lt.u32.totalorder %s886_s26, %s1256_s1 }
   0x8   :  { %p892_p2 = pnand %p890_p1, %p887_p0 }
   0xa   :  { %895 = shalt.err (!%p892_p2)
}
   0xb   :  { %s896_s7 = scalar_lea.vmem %s33_s22, 128  ;;  %p901_p4 = scmp.lt.s32.totalorder %s33_s22, %s33_s22 }
   0xc   :  { %p897_p3 = scmp.ne.s32.totalorder %s33_s22, %s896_s7  ;;  %p902_p5 = scmp.lt.s32.totalorder %s896_s7, %s896_s7 }
   0xe   :  { %p903_p6 = por %p902_p5, %p901_p4 }
  0x10   :  { %p904_p7 = pnand %p903_p6, %p897_p3 }
  0x12   :  { %907 = shalt.err (!%p904_p7)
}
  0x13   :  { %s1028_s8 = smov 64   ;;  %s1029_s9 = smov 4  }
  0x14   :  { %38 = dma.hbm_to_vmem [thread:$0]  %s1256_s1, 128, %s33_s22, [#allocation6], %s1028_s8, %s1028_s8, %s1029_s9  }
  0x15   :  { %s908_s14 = scalar_lea.hbm %s1259_s4, 2048 }
  0x16   :  { %p909_p8 = scmp.ne.s32.totalorder %s1259_s4, %s908_s14  ;;  %p912_p9 = scmp.lt.u32.totalorder %s908_s14, %s1259_s4 }
  0x18   :  { %p914_p10 = pnand %p912_p9, %p909_p8 }
  0x1a   :  { %917 = shalt.err (!%p914_p10)
}
  0x1b   :  { %s918_s19 = scalar_lea.vmem %s1074_s24, 2048  ;;  %p923_p12 = scmp.lt.s32.totalorder %s1074_s24, %s1074_s24 }
  0x1c   :  { %p919_p11 = scmp.ne.s32.totalorder %s1074_s24, %s918_s19  ;;  %p924_p13 = scmp.lt.s32.totalorder %s918_s19, %s918_s19 }
  0x1e   :  { %p925_p0 = por %p924_p13, %p923_p12 }
  0x20   :  { %p926_p1 = pnand %p925_p0, %p919_p11 }
  0x22   :  { %929 = shalt.err (!%p926_p1)
}
  0x23   :  { %s1030_s1 = smov 128   ;;  %s1031_s20 = smov 8  }
  0x24   :  { %79 = dma.hbm_to_vmem [thread:$0]  %s1259_s4, 2048, %s1074_s24, [#allocation9], %s1030_s1, %s1030_s1, %s1031_s20  }
  0x25   :  { %s1032_s23 = smov [#allocation2]   ;;  %s1033_s25 = smov [#allocation7]  }
  0x26   :  { %s20_s3 = sshll.u32 %s1032_s23, 4  ;;  %s49_s26 = sshll.u32 %s1033_s25, 4  ;;  %s21_s3 = int_to_ptr.vmem [resolvable:$true] %s20_s3  ;;  %s1111_s26 = int_to_ptr.vmem [resolvable:$true] %s49_s26 }
  0x27   :  { %s930_s29 = scalar_lea.hbm %s1255_s0, 128 }
  0x28   :  { %p931_p2 = scmp.ne.s32.totalorder %s1255_s0, %s930_s29  ;;  %p934_p3 = scmp.lt.u32.totalorder %s930_s29, %s1255_s0 }
  0x2a   :  { %p936_p4 = pnand %p934_p3, %p931_p2 }
  0x2c   :  { %939 = shalt.err (!%p936_p4)
}
  0x2d   :  { %s940_s4 = scalar_lea.vmem %s21_s3, 128  ;;  %p945_p6 = scmp.lt.s32.totalorder %s21_s3, %s21_s3 }
  0x2e   :  { %p941_p5 = scmp.ne.s32.totalorder %s21_s3, %s940_s4  ;;  %p946_p7 = scmp.lt.s32.totalorder %s940_s4, %s940_s4 }
  0x30   :  { %p947_p8 = por %p946_p7, %p945_p6 }
  0x32   :  { %p948_p9 = pnand %p947_p8, %p941_p5 }
  0x34   :  { %951 = shalt.err (!%p948_p9)
}
  0x35   :  { %26 = dma.hbm_to_vmem [thread:$0]  %s1255_s0, 128, %s21_s3, [#allocation3], %s1028_s8, %s1028_s8, %s1029_s9  }
  0x36   :  { %s952_s15 = scalar_lea.hbm %s1257_s2, 128 }
  0x37   :  { %p953_p10 = scmp.ne.s32.totalorder %s1257_s2, %s952_s15  ;;  %p956_p11 = scmp.lt.u32.totalorder %s952_s15, %s1257_s2 }
  0x39   :  { %p958_p12 = pnand %p956_p11, %p953_p10 }
  0x3b   :  { %961 = shalt.err (!%p958_p12)
}
  0x3c   :  { %s962_s21 = scalar_lea.vmem %s1111_s26, 128  ;;  %p967_p0 = scmp.lt.s32.totalorder %s1111_s26, %s1111_s26 }
  0x3d   :  { %p963_p13 = scmp.ne.s32.totalorder %s1111_s26, %s962_s21  ;;  %p968_p1 = scmp.lt.s32.totalorder %s962_s21, %s962_s21 }
  0x3f   :  { %p969_p2 = por %p968_p1, %p967_p0 }
  0x41   :  { %p970_p3 = pnand %p969_p2, %p963_p13 }
  0x43   :  { %973 = shalt.err (!%p970_p3)
}
  0x44   :  { %55 = dma.hbm_to_vmem [thread:$0]  %s1257_s2, 128, %s1111_s26, [#allocation6], %s1028_s8, %s1028_s8, %s1029_s9  }
  0x45   :  { %s1034_s23 = smov [#allocation10]   ;;  %s974_s28 = scalar_lea.hbm %s1260_s5, 2048 }
  0x46   :  { %s85_s3 = sshll.u32 %s1034_s23, 4  ;;  %p975_p4 = scmp.ne.s32.totalorder %s1260_s5, %s974_s28  ;;  %s86_s3 = int_to_ptr.vmem [resolvable:$true] %s85_s3 }
  0x47   :  { %p978_p5 = scmp.lt.u32.totalorder %s974_s28, %s1260_s5 }
  0x49   :  { %p980_p6 = pnand %p978_p5, %p975_p4 }
  0x4b   :  { %983 = shalt.err (!%p980_p6)
}
  0x4c   :  { %s984_s11 = scalar_lea.vmem %s86_s3, 2048  ;;  %p989_p8 = scmp.lt.s32.totalorder %s86_s3, %s86_s3 }
  0x4d   :  { %p985_p7 = scmp.ne.s32.totalorder %s86_s3, %s984_s11  ;;  %p990_p9 = scmp.lt.s32.totalorder %s984_s11, %s984_s11 }
  0x4f   :  { %p991_p10 = por %p990_p9, %p989_p8 }
  0x51   :  { %p992_p11 = pnand %p991_p10, %p985_p7 }
  0x53   :  { %995 = shalt.err (!%p992_p11)
}
  0x54   :  { %91 = dma.hbm_to_vmem [thread:$0]  %s1260_s5, 2048, %s86_s3, [#allocation9], %s1030_s1, %s1030_s1, %s1031_s20  }
  0x55   :  { %1018 = dma.done.wait [#allocation3], 128  }
  0x56   :  { %1019 = vsyncadd [#allocation3], 4294967168 }
  0x57   :  { %1020 = dma.done.wait [#allocation6], 256  }
  0x58   :  { %1021 = vsyncadd [#allocation6], 4294967040 }
  0x59   :  { %1022 = dma.done.wait [#allocation9], 4096  }
  0x5a   :  { %1023 = vsyncadd [#allocation9], 4294963200  ;;  %v159_v0 = vlaneseq  ;;  %v1035_v1 = vmov 0.0|0.0   ;;  %vm1036_vm0 = vmmov 0   ;;  %v1037_v2 = vmov 0.0   ;;  %v143_v7 = vld [vmem:[#allocation10] sm:$0xff] }
  0x5b   :  { %773 = vmatprep.subr.bf16.mxu0 %v1035_v1  ;;  %821 = vmatprep.subr.bf16.mxu1 %v1035_v1  ;;  %v144_v8 = vld [vmem:[#allocation10 + $0x8] sm:$0xff]  ;;  %v145_v9 = vld [vmem:[#allocation10 + $0x10] sm:$0xff]  ;;  %v146_v11 = vld [vmem:[#allocation10 + $0x18] sm:$0xff]  ;;  %v191_v42 = vrot.slane %v1037_v2, 5  ;;  %vm193_vm2 = vcmask 1042432   ;;  %vm337_vm3 = vcmask 1043456  }
  0x5c   :  { %665 = vmatprep.mubr.msk.f32.mxu0 %vm1036_vm0, %v1037_v2  ;;  %735 = vmatprep.mubr.msk.f32.mxu1 %vm1036_vm0, %v1037_v2  ;;  %v1169_v3 = vshrl.u32 %v159_v0, 7  ;;  %v165_v4 = vand.u32 127, %v159_v0  ;;  %v774_v10 = vpack.c.bf16 %v144_v8, %v143_v7  ;;  %v777_v12 = vpack.c.bf16 %v146_v11, %v145_v9  ;;  %v147_v13 = vld [vmem:[#allocation10 + $0x20] sm:$0xff]  ;;  %v148_v14 = vld [vmem:[#allocation10 + $0x28] sm:$0xff]  ;;  %v149_v20 = vld [vmem:[#allocation10 + $0x30] sm:$0xff]  ;;  %s1038_s5 = smov [#allocation11]  }
  0x5d   :  { %v173_v15 = vld [vmem:[#allocation2] sm:$0xf]  ;;  %v356_v17 = vld [vmem:[#allocation2 + $0x4] sm:$0xf]  ;;  %v780_v18 = vpack.c.bf16 %v148_v14, %v147_v13  ;;  %v150_v21 = vld [vmem:[#allocation10 + $0x38] sm:$0xff]  ;;  %s543_s9 = sshll.u32 %s1038_s5, 4  ;;  %s544_s9 = int_to_ptr.vmem [resolvable:$true] %s543_s9 }
  0x5e   :  { %v167_v5 = vmul.u32 128, %v1169_v3  ;;  %775 = vmatpush3.bf16.msra.mxu0 %v774_v10  ;;  %823 = vmatpush3.bf16.msra.mxu1 %v774_v10  ;;  %vm166_vm1 = vcmp.lt.s32.totalorder %v1169_v3, 4  ;;  %v783_v22 = vpack.c.bf16 %v150_v21, %v149_v20  ;;  %v151_v23 = vld [vmem:[#allocation10 + $0x40] sm:$0xff]  ;;  %v152_v24 = vld [vmem:[#allocation10 + $0x48] sm:$0xff]  ;;  %v153_v26 = vld [vmem:[#allocation10 + $0x50] sm:$0xff]  ;;  %vm534_vm5 = vcmask 1040384   ;;  %p1001_p13 = scmp.lt.s32.totalorder %s544_s9, %s544_s9 }
  0x5f   :  { %776 = vmatprep.subr.bf16.mxu0 %v1035_v1  ;;  %824 = vmatprep.subr.bf16.mxu1 %v1035_v1  ;;  %v1179_v16 = vsel %vm166_vm1, %v173_v15, 0.0  ;;  %v1183_v19 = vsel %vm166_vm1, %v356_v17, 0.0  ;;  %v786_v25 = vpack.c.bf16 %v152_v24, %v151_v23  ;;  %v154_v27 = vld [vmem:[#allocation10 + $0x58] sm:$0xff]  ;;  %v174_v28 = vld [vmem:[#allocation5] sm:$0xf]  ;;  %v155_v31 = vld [vmem:[#allocation10 + $0x60] sm:$0xff] }
  0x60   :  { %v1172_v6 = vadd.s32 %v167_v5, %v165_v4  ;;  %v358_v29 = vld [vmem:[#allocation5 + $0x4] sm:$0xf]  ;;  %v789_v30 = vpack.c.bf16 %v154_v27, %v153_v26  ;;  %v156_v32 = vld [vmem:[#allocation10 + $0x68] sm:$0xff]  ;;  %v1193_v33 = vsub.f32 %v173_v15, %v174_v28  ;;  %v158_v37 = vld [vmem:[#allocation10 + $0x78] sm:$0xff]  ;;  %v346_v9 = vmul.f32 %v1179_v16, %v1179_v16  ;;  %s996_s1 = scalar_lea.vmem %s544_s9, 32 }
  0x61   :  { %v1195_v34 = vsub.f32 %v356_v17, %v358_v29  ;;  %v792_v35 = vpack.c.bf16 %v156_v32, %v155_v31  ;;  %v157_v36 = vld [vmem:[#allocation10 + $0x70] sm:$0xff]  ;;  %v127_v44 = vld [vmem:[#allocation8] sm:$0xff]  ;;  %v128_v45 = vld [vmem:[#allocation8 + $0x8] sm:$0xff]  ;;  %v525_v10 = vmul.f32 %v1183_v19, %v1183_v19  ;;  %p997_p12 = scmp.ne.s32.totalorder %s544_s9, %s996_s1  ;;  %p1002_p0 = scmp.lt.s32.totalorder %s996_s1, %s996_s1 }
  0x62   :  { %778 = vmatpush3.bf16.msra.mxu0 %v777_v12  ;;  %826 = vmatpush3.bf16.msra.mxu1 %v777_v12  ;;  %v178_v38 = vsel %vm166_vm1, %v1193_v33, 0.0  ;;  %v795_v40 = vpack.c.bf16 %v158_v37, %v157_v36  ;;  %v798_v47 = vpack.c.bf16 %v128_v45, %v127_v44  ;;  %v129_v49 = vld [vmem:[#allocation8 + $0x10] sm:$0xff]  ;;  %v130_v50 = vld [vmem:[#allocation8 + $0x18] sm:$0xff]  ;;  %v131_v52 = vld [vmem:[#allocation8 + $0x20] sm:$0xff]  ;;  %v347_v11 = vsel %vm337_vm3, %v346_v9, 0.0 }
  0x63   :  { %779 = vmatprep.subr.bf16.mxu0 %v1035_v1  ;;  %827 = vmatprep.subr.bf16.mxu1 %v1035_v1  ;;  %v360_v39 = vsel %vm166_vm1, %v1195_v34, 0.0  ;;  %v188_v41 = vrot.slane %v178_v38, 1  ;;  %v801_v51 = vpack.c.bf16 %v130_v50, %v129_v49  ;;  %v132_v53 = vld [vmem:[#allocation8 + $0x28] sm:$0xff]  ;;  %v133_v55 = vld [vmem:[#allocation8 + $0x30] sm:$0xff]  ;;  %v134_v56 = vld [vmem:[#allocation8 + $0x38] sm:$0xff]  ;;  %v348_v12 = vrot.slane %v347_v11, 4  ;;  %p1003_p1 = por %p1002_p0, %p1001_p13 }
  0x64   :  { %v369_v43 = vrot.slane %v360_v39, 1  ;;  %v804_v54 = vpack.c.bf16 %v132_v53, %v131_v52  ;;  %v807_v57 = vpack.c.bf16 %v134_v56, %v133_v55  ;;  %v135_v58 = vld [vmem:[#allocation8 + $0x40] sm:$0xff]  ;;  %v136_v59 = vld [vmem:[#allocation8 + $0x48] sm:$0xff]  ;;  %v137_v61 = vld [vmem:[#allocation8 + $0x50] sm:$0xff]  ;;  %vm169_vm4 = vcmp.lt.s32.totalorder %v1172_v6, 386 }
  0x65   :  { %v194_v46 = vsel %vm193_vm2, %v188_v41, %v191_v42  ;;  %v810_v60 = vpack.c.bf16 %v136_v59, %v135_v58  ;;  %v138_v62 = vld [vmem:[#allocation8 + $0x58] sm:$0xff]  ;;  %v139_v0 = vld [vmem:[#allocation8 + $0x60] sm:$0xff]  ;;  %v141_v5 = vld [vmem:[#allocation8 + $0x70] sm:$0xff]  ;;  %v349_v14 = vadd.f32 %v348_v12, %v347_v11  ;;  %p1004_p2 = pnand %p1003_p1, %p997_p12 }
  0x66   :  { %781 = vmatpush3.bf16.msra.mxu0 %v780_v18  ;;  %829 = vmatpush3.bf16.msra.mxu1 %v780_v18  ;;  %v374_v48 = vsel %vm193_vm2, %v369_v43, %v191_v42  ;;  %v813_v63 = vpack.c.bf16 %v138_v62, %v137_v61  ;;  %v142_v7 = vld [vmem:[#allocation8 + $0x78] sm:$0xff] }
  0x67   :  { %782 = vmatprep.subr.bf16.mxu0 %v1035_v1  ;;  %830 = vmatprep.subr.bf16.mxu1 %v1035_v1  ;;  %v819_v8 = vpack.c.bf16 %v142_v7, %v141_v5  ;;  %v350_v17 = vrot.slane %v349_v14, 2 }
  0x69   :  { %v351_v20 = vadd.f32 %v350_v17, %v349_v14 }
  0x6a   :  { %784 = vmatpush3.bf16.msra.mxu0 %v783_v22  ;;  %832 = vmatpush3.bf16.msra.mxu1 %v783_v22 }
  0x6b   :  { %785 = vmatprep.subr.bf16.mxu0 %v1035_v1  ;;  %833 = vmatprep.subr.bf16.mxu1 %v1035_v1  ;;  %v352_v21 = vrot.slane %v351_v20, 1 }
  0x6d   :  { %v353_v23 = vadd.f32 %v352_v21, %v351_v20 }
  0x6e   :  { %787 = vmatpush3.bf16.msra.mxu0 %v786_v25  ;;  %835 = vmatpush3.bf16.msra.mxu1 %v786_v25 }
  0x6f   :  { %788 = vmatprep.subr.bf16.mxu0 %v1035_v1  ;;  %836 = vmatprep.subr.bf16.mxu1 %v1035_v1 }
  0x72   :  { %790 = vmatpush3.bf16.msra.mxu0 %v789_v30  ;;  %838 = vmatpush3.bf16.msra.mxu1 %v789_v30 }
  0x73   :  { %791 = vmatprep.subr.bf16.mxu0 %v1035_v1  ;;  %839 = vmatprep.subr.bf16.mxu1 %v1035_v1 }
  0x76   :  { %793 = vmatpush3.bf16.msra.mxu0 %v792_v35  ;;  %841 = vmatpush3.bf16.msra.mxu1 %v792_v35 }
  0x77   :  { %794 = vmatprep.subr.bf16.mxu0 %v1035_v1  ;;  %842 = vmatprep.subr.bf16.mxu1 %v1035_v1 }
  0x7a   :  { %796 = vmatpush3.bf16.msra.mxu0 %v795_v40  ;;  %844 = vmatpush3.bf16.msra.mxu1 %v795_v40 }
  0x7b   :  { %797 = vmatprep.subr.bf16.mxu0 %v1035_v1  ;;  %845 = vmatprep.subr.bf16.mxu1 %v1035_v1 }
  0x7d   :  { %666 = vmatmul.mubr.f32.vlgmr.msra.gmra.mrb[0].mxu0 %v194_v46  ;;  %736 = vmatmul.mubr.f32.vlgmr.msra.gmra.mrb[0].mxu1 %v374_v48 }
  0x7e   :  { %799 = vmatpush3.bf16.msra.mxu0 %v798_v47  ;;  %847 = vmatpush3.bf16.msra.mxu1 %v798_v47 }
  0x7f   :  { %800 = vmatprep.subr.bf16.mxu0 %v1035_v1  ;;  %848 = vmatprep.subr.bf16.mxu1 %v1035_v1 }
  0x80   :  { %700 = vmatprep.mubr.msk.f32.mxu0 %vm1036_vm0, %v1037_v2  ;;  %770 = vmatprep.mubr.msk.f32.mxu1 %vm1036_vm0, %v1037_v2  ;;  %v140_v2 = vld [vmem:[#allocation8 + $0x68] sm:$0xff] }
  0x81   :  { %v816_v4 = vpack.c.bf16 %v140_v2, %v139_v0 }
  0x82   :  { %802 = vmatpush3.bf16.msra.mxu0 %v801_v51  ;;  %850 = vmatpush3.bf16.msra.mxu1 %v801_v51 }
  0x83   :  { %803 = vmatprep.subr.bf16.mxu0 %v1035_v1  ;;  %851 = vmatprep.subr.bf16.mxu1 %v1035_v1 }
  0x86   :  { %805 = vmatpush3.bf16.msra.mxu0 %v804_v54  ;;  %853 = vmatpush3.bf16.msra.mxu1 %v804_v54 }
  0x87   :  { %806 = vmatprep.subr.bf16.mxu0 %v1035_v1  ;;  %854 = vmatprep.subr.bf16.mxu1 %v1035_v1 }
  0x8a   :  { %808 = vmatpush3.bf16.msra.mxu0 %v807_v57  ;;  %856 = vmatpush3.bf16.msra.mxu1 %v807_v57 }
  0x8b   :  { %809 = vmatprep.subr.bf16.mxu0 %v1035_v1  ;;  %857 = vmatprep.subr.bf16.mxu1 %v1035_v1 }
  0x8e   :  { %811 = vmatpush3.bf16.msra.mxu0 %v810_v60  ;;  %859 = vmatpush3.bf16.msra.mxu1 %v810_v60 }
  0x8f   :  { %812 = vmatprep.subr.bf16.mxu0 %v1035_v1  ;;  %860 = vmatprep.subr.bf16.mxu1 %v1035_v1 }
  0x92   :  { %814 = vmatpush3.bf16.msra.mxu0 %v813_v63  ;;  %862 = vmatpush3.bf16.msra.mxu1 %v813_v63 }
  0x93   :  { %815 = vmatprep.subr.bf16.mxu0 %v1035_v1  ;;  %863 = vmatprep.subr.bf16.mxu1 %v1035_v1 }
  0x96   :  { %817 = vmatpush3.bf16.msra.mxu0 %v816_v4  ;;  %865 = vmatpush3.bf16.msra.mxu1 %v816_v4 }
  0x97   :  { %818 = vmatprep.subr.bf16.mxu0 %v1035_v1  ;;  %866 = vmatprep.subr.bf16.mxu1 %v1035_v1  ;;  %v526_v1 = vsel %vm337_vm3, %v525_v10, 0.0 }
  0x98   :  { %v527_v13 = vrot.slane %v526_v1, 4 }
  0x9a   :  { %820 = vmatpush3.bf16.msra.mxu0 %v819_v8  ;;  %868 = vmatpush3.bf16.msra.mxu1 %v819_v8  ;;  %v528_v15 = vadd.f32 %v527_v13, %v526_v1 }
  0x9c   :  { %v529_v18 = vrot.slane %v528_v15, 2 }
  0x9d   :  { %701 = vmatmul.mubr.msk.f32.vlgmr.msra.gmra.mrb[0].mxu0 %vm166_vm1, %v1193_v33  ;;  %771 = vmatmul.mubr.msk.f32.vlgmr.msra.gmra.mrb[0].mxu1 %vm166_vm1, %v1195_v34 }
  0x9e   :  { %v530_v3 = vadd.f32 %v529_v18, %v528_v15 }
  0xa0   :  { %v531_v22 = vrot.slane %v530_v3, 1 }
  0xa2   :  { %v532_v16 = vadd.f32 %v531_v22, %v530_v3 }
  0xa4   :  { %v533_v24 = vadd.f32 %v532_v16, %v353_v23 }
 0x170   :  { %v331_v19 = vpop.f32.mrb[0].mxu0  ;;  %v511_v25 = vpop.f32.mrb[0].mxu1 }
 0x171   :  { %v335_v26 = vmul.f32 %v331_v19, %v331_v19  ;;  %v515_v27 = vmul.f32 %v511_v25, %v511_v25  ;;  %v702_v28 = vpop.f32.mrb[1].mxu0  ;;  %v772_v29 = vpop.f32.mrb[1].mxu1 }
 0x173   :  { %v336_v30 = vsel %vm169_vm4, %v335_v26, 0.0  ;;  %v516_v31 = vsel %vm169_vm4, %v515_v27, 0.0 }
 0x174   :  { %v338_v32 = vsel %vm337_vm3, %v336_v30, 0.0  ;;  %v517_v33 = vsel %vm337_vm3, %v516_v31, 0.0 }
 0x175   :  { %v339_v34 = vrot.slane %v338_v32, 4  ;;  %v518_v35 = vrot.slane %v517_v33, 4 }
 0x177   :  { %v340_v36 = vadd.f32 %v339_v34, %v338_v32  ;;  %v519_v37 = vadd.f32 %v518_v35, %v517_v33 }
 0x179   :  { %v341_v38 = vrot.slane %v340_v36, 2  ;;  %v520_v39 = vrot.slane %v519_v37, 2 }
 0x17b   :  { %v342_v40 = vadd.f32 %v341_v38, %v340_v36  ;;  %v521_v6 = vadd.f32 %v520_v39, %v519_v37 }
 0x17d   :  { %v343_v41 = vrot.slane %v342_v40, 1  ;;  %v522_v42 = vrot.slane %v521_v6, 1 }
 0x17f   :  { %v344_v43 = vadd.f32 %v343_v41, %v342_v40  ;;  %v523_v44 = vadd.f32 %v522_v42, %v521_v6 }
 0x181   :  { %v524_v45 = vadd.f32 %v523_v44, %v344_v43 }
 0x183   :  { %v535_v46 = vsel %vm534_vm5, %v524_v45, %v533_v24 }
 0x184   :  { %536 = vst [vmem:[#allocation11] sm:$0x3] %v535_v46 }
 0x185   :  { %1007 = shalt.err (!%p1004_p2)
}
 0x186   :  { %s1008_s4 = scalar_lea.hbm %s1261_s6, 32 }
 0x187   :  { %p1009_p3 = scmp.ne.s32.totalorder %s1261_s6, %s1008_s4  ;;  %p1012_p4 = scmp.lt.u32.totalorder %s1008_s4, %s1261_s6 }
 0x189   :  { %p1014_p5 = pnand %p1012_p4, %p1009_p3 }
 0x18b   :  { %1017 = shalt.err (!%p1014_p5)
}
 0x18c   :  { %546 = dma.vmem_to_hbm [thread:$0]  %s544_s9, 32, %s1261_s6, [#allocation4]  }
 0x18d   :  { %1024 = dma.done.wait [#allocation4], 32  }
 0x18e   :  { %1025 = vsyncadd [#allocation4], 4294967264 }
 0x18f   :  { %550 = vsyncpa [#allocation3], 1 }
 0x190   :  { %551 = vsyncpa [#allocation6], 1 }
 0x191   :  { %552 = vsyncpa [#allocation9], 1 }
 0x192   :  { %553 = vsyncpa [#allocation4], 1 }

</bundles_post_ra>
